<compile_context>
chip_gen: v7x
topology: tpu7x:2x2x1
jax: 0.10.0
libtpu: 0.0.40
codegen_flags: <defaults>
</compile_context>

<pallas_src>
import functools

import jax
import jax.numpy as jnp
import numpy as np
from jax.experimental import pallas as pl
from jax.experimental.pallas import tpu as pltpu

LANE = 128


# ---------------------------------------------------------------------------
# Helpers: rounding / padding / per-generation tile + VMEM selection
# ---------------------------------------------------------------------------
def _round_up(x, m):
    return ((x + m - 1) // m) * m


def _pad2d(x, rows, cols, dtype):
    """Zero-pad a 2-D array to (rows, cols) and cast to dtype."""
    r, c = x.shape
    out = jnp.zeros((rows, cols), dtype)
    return out.at[:r, :c].set(x.astype(dtype))


def _hw_config():
    """Per-generation tile targets and scoped-VMEM limit."""
    try:
        kind = jax.devices()[0].device_kind.lower()
    except Exception:
        kind = ""
    if "v7" in kind or "7x" in kind:
        # v7x: 64 MiB physical VMEM, 2 TensorCores -> keep >= 2 dst blocks so
        # the "parallel" dst axis can actually shard across the cores.
        return {"tm": 512, "tk": 2048, "vmem": 48 * 1024 * 1024, "min_dst_blocks": 2}
    # v5e / v6e: 128 MiB physical VMEM (default scoped limit is far lower).
    return {"tm": 1024, "tk": 4096, "vmem": 64 * 1024 * 1024, "min_dst_blocks": 1}


def _pick_tile(n_p, target, min_blocks=1):
    """Largest multiple-of-128 divisor of n_p that is <= target (never
    overshoots the 128-padded extent) and, when possible, leaves at least
    `min_blocks` blocks.  n_p must be a multiple of 128."""
    units = n_p // LANE
    best = LANE
    for d in range(1, units + 1):
        if units % d == 0:
            t = d * LANE
            if t <= target and units // d >= min_blocks:
                best = t
    return best


# ---------------------------------------------------------------------------
# Pallas kernel 1: row-tiled dense projection  H = X @ W   (bf16 out, f32 acc)
# ---------------------------------------------------------------------------
def _project_kernel(x_ref, w_ref, o_ref):
    o_ref[...] = jnp.dot(x_ref[...], w_ref[...],
                         preferred_element_type=jnp.float32).astype(o_ref.dtype)


def _project(x_p, w_p, tr, vmem_limit):
    n, f = x_p.shape
    c = w_p.shape[1]
    return pl.pallas_call(
        _project_kernel,
        out_shape=jax.ShapeDtypeStruct((n, c), jnp.bfloat16),
        grid_spec=pltpu.PrefetchScalarGridSpec(
            num_scalar_prefetch=0,
            grid=(n // tr,),
            in_specs=[pl.BlockSpec((tr, f), lambda i: (i, 0)),
                      pl.BlockSpec((f, c), lambda i: (0, 0))],   # weight: grid-invariant
            out_specs=pl.BlockSpec((tr, c), lambda i: (i, 0)),
        ),
        compiler_params=pltpu.CompilerParams(
            dimension_semantics=("parallel",),
            vmem_limit_bytes=vmem_limit),
    )(x_p, w_p)


# ---------------------------------------------------------------------------
# Pallas kernel 2: tiled mean-aggregation + self term + bias (+ReLU)
#   acc[i] += A_counts[i, k] @ H[k]                (k = reduction axis, last)
#   epilogue: out = acc * inv_deg + x_dst @ W_r + b_l   (ReLU optional)
# ---------------------------------------------------------------------------
def _sage_agg_kernel(a_ref, h_ref, xd_ref, wr_ref, b_ref, dinv_ref, o_ref,
                     acc_ref, *, apply_relu):
    k = pl.program_id(1)

    @pl.when(k == 0)
    def _init():
        acc_ref[...] = jnp.zeros_like(acc_ref)

    # int8 edge counts -> bf16 in-register (v7x MXU has no int path; the H
    # operand stream is bf16 anyway on v5e/v6e).
    acc_ref[...] += jnp.dot(a_ref[...].astype(jnp.bfloat16), h_ref[...],
                            preferred_element_type=jnp.float32)

    @pl.when(k == pl.num_programs(1) - 1)
    def _epilogue():
        out = (acc_ref[...] * dinv_ref[...]                       # exact f32 mean
               + jnp.dot(xd_ref[...], wr_ref[...],
                         preferred_element_type=jnp.float32)
               + b_ref[...])
        if apply_relu:
            out = jnp.maximum(out, 0.0)
        o_ref[...] = out.astype(o_ref.dtype)


def sage_conv(a_counts, inv_deg, x_src_p, x_dst_p, layer, *, apply_relu, out_dtype):
    """One SAGEConv((F_src, F_dst), C) forward on padded, lane-dense operands.

    a_counts : [n_dst_p, n_src_p] int8 edge counts (128-padded)
    inv_deg  : [n_dst_p, 1]       f32 reciprocal in-degree (1 for isolated rows)
    x_src_p  : [n_src_p, F_src_p] bf16
    x_dst_p  : [n_dst_p, F_dst_p] bf16
    returns  : [n_dst_p, C_p]     out_dtype (still padded / lane-dense)
    """
    w_l, w_r, b_l = layer['w_l'], layer['w_r'], layer['b_l']
    n_dst_p, n_src_p = a_counts.shape
    f_dst_p = w_r.shape[0]
    c_p = w_l.shape[1]
    assert x_src_p.shape == (n_src_p, w_l.shape[0])
    assert x_dst_p.shape == (n_dst_p, f_dst_p)
    assert inv_deg.shape == (n_dst_p, 1)

    cfg = _hw_config()
    tm = _pick_tile(n_dst_p, cfg["tm"], min_blocks=cfg["min_dst_blocks"])
    tk = _pick_tile(n_src_p, cfg["tk"])
    n_k = n_src_p // tk

    # 1) project the src features once: H = x_src @ W_l  (lane-dense, bf16)
    h = _project(x_src_p, w_l, tk, cfg["vmem"])                  # [n_src_p, c_p]

    # A is ~100% of the streamed bytes: deepen its pipeline when the k-loop is long.
    if n_k >= 3:
        a_spec = pl.BlockSpec((tm, tk), lambda i, k: (i, k),
                              pipeline_mode=pl.Buffered(3))
    else:
        a_spec = pl.BlockSpec((tm, tk), lambda i, k: (i, k))

    # 2) tiled aggregation with f32 accumulator + fused epilogue
    return pl.pallas_call(
        functools.partial(_sage_agg_kernel, apply_relu=apply_relu),
        out_shape=jax.ShapeDtypeStruct((n_dst_p, c_p), out_dtype),
        grid_spec=pltpu.PrefetchScalarGridSpec(
            num_scalar_prefetch=0,
            grid=(n_dst_p // tm, n_k),
            in_specs=[
                a_spec,                                               # A counts (int8)
                pl.BlockSpec((tk, c_p), lambda i, k: (k, 0)),         # H tile
                pl.BlockSpec((tm, f_dst_p), lambda i, k: (i, 0)),     # x_dst (k-invariant)
                pl.BlockSpec((f_dst_p, c_p), lambda i, k: (0, 0)),    # W_r (grid-invariant)
                pl.BlockSpec((1, c_p), lambda i, k: (0, 0)),          # bias (grid-invariant)
                pl.BlockSpec((tm, 1), lambda i, k: (i, 0)),           # 1/deg (k-invariant)
            ],
            out_specs=pl.BlockSpec((tm, c_p), lambda i, k: (i, 0)),
            scratch_shapes=[pltpu.VMEM((tm, c_p), jnp.float32)],
        ),
        compiler_params=pltpu.CompilerParams(
            dimension_semantics=("parallel", "arbitrary"),
            vmem_limit_bytes=cfg["vmem"]),
    )(a_counts, h, x_dst_p, w_r, b_l, inv_deg)


# ---------------------------------------------------------------------------
# Adjacency: padded int8 edge counts + exact f32 reciprocal in-degree (O(E))
# ---------------------------------------------------------------------------
def build_adj_counts(dst_idx, src_idx, n_dst_p, n_src_p):
    # NOTE: assumes < 128 parallel edges per (dst, src) pair (int8 counts).
    # TODO(synk): for production-scale sparse graphs, replace the dense count
    # matrix with a blocked-sparse / CSR scalar-prefetch path that skips empty
    # (i, k) tiles, converting O(N_dst*N_src) HBM traffic into O(E).
    counts = jnp.zeros((n_dst_p, n_src_p), jnp.int8).at[dst_idx, src_idx].add(jnp.int8(1))
    deg = jnp.zeros((n_dst_p,), jnp.float32).at[dst_idx].add(1.0)
    inv_deg = (1.0 / jnp.maximum(deg, 1.0))[:, None]   # isolated rows -> mean term 0
    return counts, inv_deg


# ---------------------------------------------------------------------------
# Parameter init (deterministic, glorot-uniform-like; 128-padded / lane-dense)
# ---------------------------------------------------------------------------
def _glorot(key, shape):
    fan_in, fan_out = shape
    lim = (6.0 / (fan_in + fan_out)) ** 0.5
    return jax.random.uniform(key, shape, jnp.float32, -lim, lim)


def init_sage_params(key, in_src, in_dst, out_c):
    k1, k2 = jax.random.split(key)
    w_l = _glorot(k1, (in_src, out_c))
    w_r = _glorot(k2, (in_dst, out_c))
    b_l = jnp.zeros((1, out_c), jnp.float32)
    c_p = _round_up(out_c, LANE)
    return {
        'w_l': _pad2d(w_l, _round_up(in_src, LANE), c_p, jnp.bfloat16),
        'w_r': _pad2d(w_r, _round_up(in_dst, LANE), c_p, jnp.bfloat16),
        'b_l': _pad2d(b_l, 1, c_p, jnp.float32),
        'out_c': out_c,
    }


def init_params(key, num_features, hidden_channels, num_classes):
    ks = jax.random.split(key, 4)
    return {
        'user_conv1':    init_sage_params(ks[0], num_features, num_features, hidden_channels),
        'user_conv2':    init_sage_params(ks[1], hidden_channels, hidden_channels, num_classes),
        'product_conv1': init_sage_params(ks[2], num_features, num_features, hidden_channels),
        'product_conv2': init_sage_params(ks[3], hidden_channels, hidden_channels, num_classes),
    }


# ---------------------------------------------------------------------------
# BipartiteGNN forward (eval mode; dropout == identity)
# ---------------------------------------------------------------------------
def bipartite_gnn_forward(params, x_user, x_product, edge_index):
    u_idx = edge_index[0].astype(jnp.int32)
    p_idx = edge_index[1].astype(jnp.int32)
    n_user, n_prod = x_user.shape[0], x_product.shape[0]
    n_user_p = _round_up(n_user, LANE)
    n_prod_p = _round_up(n_prod, LANE)
    f_p = params['user_conv1']['w_l'].shape[0]

    # Pad node features once (bf16, lane-dense); intermediates stay padded.
    xu_p = _pad2d(x_user, n_user_p, f_p, jnp.bfloat16)
    xp_p = _pad2d(x_product, n_prod_p, f_p, jnp.bfloat16)

    # Layer-1 adjacencies (built once, in padded shape and final dtype):
    #   user_conv1((x_user, x_product), edge_index):        src=user,    dst=product
    #   product_conv1((x_product, x_user), flipped edges):  src=product, dst=user
    a_u1, d_u1 = build_adj_counts(p_idx, u_idx, n_prod_p, n_user_p)
    a_p1, d_p1 = build_adj_counts(u_idx, p_idx, n_user_p, n_prod_p)

    x_user_1 = sage_conv(a_u1, d_u1, xu_p, xp_p, params['user_conv1'],
                         apply_relu=True, out_dtype=jnp.bfloat16)      # [n_prod_p, hid_p]
    # dropout(p=0.5) is identity in eval mode
    x_product_1 = sage_conv(a_p1, d_p1, xp_p, xu_p, params['product_conv1'],
                            apply_relu=True, out_dtype=jnp.bfloat16)   # [n_user_p, hid_p]

    # Layer 2: the reference indexes x_user_1 (n_prod rows) with user ids and
    # x_product_1 (n_user rows) with product ids — only meaningful when
    # n_user == n_prod, in which case layer-2 adjacencies equal layer 1's and
    # are reused (no duplicate O(N^2) scatter / HBM materialization).
    if n_user == n_prod:
        (a_u2, d_u2), (a_p2, d_p2) = (a_u1, d_u1), (a_p1, d_p1)
    else:
        # TODO(synk): reference layer-2 wiring is ill-defined for n_user != n_prod.
        a_u2, d_u2 = build_adj_counts(p_idx, u_idx, n_user_p, n_prod_p)
        a_p2, d_p2 = build_adj_counts(u_idx, p_idx, n_prod_p, n_user_p)

    x_user_2 = sage_conv(a_u2, d_u2, x_user_1, x_product_1, params['user_conv2'],
                         apply_relu=False, out_dtype=jnp.float32)      # [n_user_p, c_p]
    x_product_2 = sage_conv(a_p2, d_p2, x_product_1, x_user_1, params['product_conv2'],
                            apply_relu=False, out_dtype=jnp.float32)   # [n_prod_p, c_p]

    nc = params['user_conv2']['out_c']
    return {'user': x_user_2[:n_user, :nc], 'product': x_product_2[:n_prod, :nc]}


# ---------------------------------------------------------------------------
# Pure-JAX dense reference (f32) for the correctness check
# ---------------------------------------------------------------------------
def _reference_forward(params, x_user, x_product, edge_index):
    u_idx = edge_index[0].astype(jnp.int32)
    p_idx = edge_index[1].astype(jnp.int32)
    xu = x_user.astype(jnp.bfloat16).astype(jnp.float32)
    xp = x_product.astype(jnp.bfloat16).astype(jnp.float32)

    def conv(x_src, x_dst, dst_idx, src_idx, layer, relu):
        oc = layer['out_c']
        w_l = layer['w_l'].astype(jnp.float32)[:x_src.shape[1], :oc]
        w_r = layer['w_r'].astype(jnp.float32)[:x_dst.shape[1], :oc]
        b = layer['b_l'].astype(jnp.float32)[0, :oc]
        a = jnp.zeros((x_dst.shape[0], x_src.shape[0]), jnp.float32)
        a = a.at[dst_idx, src_idx].add(1.0)
        a = a / jnp.maximum(a.sum(axis=1, keepdims=True), 1.0)
        out = a @ (x_src @ w_l) + x_dst @ w_r + b
        return jnp.maximum(out, 0.0) if relu else out

    xu1 = conv(xu, xp, p_idx, u_idx, params['user_conv1'], True)
    xp1 = conv(xp, xu, u_idx, p_idx, params['product_conv1'], True)
    xu2 = conv(xu1, xp1, p_idx, u_idx, params['user_conv2'], False)
    xp2 = conv(xp1, xu1, u_idx, p_idx, params['product_conv2'], False)
    return {'user': xu2, 'product': xp2}


# ---------------------------------------------------------------------------
if __name__ == "__main__":
    num_features, hidden_channels, num_classes = 8, 32, 4
    n_user, n_prod, n_edges = 16, 16, 48

    key = jax.random.PRNGKey(0)
    k_xu, k_xp, k_eu, k_ep, k_par = jax.random.split(key, 5)

    x_user = jax.random.normal(k_xu, (n_user, num_features), jnp.float32)
    x_product = jax.random.normal(k_xp, (n_prod, num_features), jnp.float32)
    u_idx = jax.random.randint(k_eu, (n_edges,), 0, n_user, jnp.int32)
    p_idx = jax.random.randint(k_ep, (n_edges,), 0, n_prod, jnp.int32)
    edge_index = jnp.stack([u_idx, p_idx], axis=0)

    params = init_params(k_par, num_features, hidden_channels, num_classes)

    out = bipartite_gnn_forward(params, x_user, x_product, edge_index)
    jax.block_until_ready(out)

    assert out['user'].shape == (n_user, num_classes)
    assert out['product'].shape == (n_prod, num_classes)
    assert bool(jnp.all(jnp.isfinite(out['user']))) and bool(jnp.all(jnp.isfinite(out['product'])))

    ref = _reference_forward(params, x_user, x_product, edge_index)
    np.testing.assert_allclose(np.asarray(out['user']), np.asarray(ref['user']),
                               rtol=5e-2, atol=5e-2)
    np.testing.assert_allclose(np.asarray(out['product']), np.asarray(ref['product']),
                               rtol=5e-2, atol=5e-2)
    print("KERNEL_OK")
</pallas_src>

<mosaic_0001>
module attributes {stable_mosaic.version = 11 : i64} {
  func.func @_project_kernel(%arg0: i32, %arg1: memref<128x128xbf16, #tpu.memory_space<vmem>>, %arg2: memref<128x128xbf16, #tpu.memory_space<vmem>>, %arg3: memref<128x128xbf16, #tpu.memory_space<vmem>>) attributes {dimension_semantics = [#tpu.dimension_semantics<parallel>], iteration_bounds = array<i64: 1>, scalar_prefetch = 0 : i64, scratch_operands = 0 : i64, tpu.core_type = #tpu.core_type<tc>, window_params = [{transform_indices = @transform_0, window_bounds = array<i64: 128, 128>}, {pipeline_mode = #tpu.pipeline_mode<synchronous>, transform_indices = @transform_1, window_bounds = array<i64: 128, 128>}, {transform_indices = @transform_2, window_bounds = array<i64: 128, 128>}]} {
    %c0 = arith.constant 0 : index
    %c0_0 = arith.constant 0 : index
    %0 = vector.load %arg1[%c0, %c0_0] : memref<128x128xbf16, #tpu.memory_space<vmem>>, vector<128x128xbf16>
    %c0_1 = arith.constant 0 : index
    %c0_2 = arith.constant 0 : index
    %1 = vector.load %arg2[%c0_1, %c0_2] : memref<128x128xbf16, #tpu.memory_space<vmem>>, vector<128x128xbf16>
    %cst = arith.constant dense<0.000000e+00> : vector<128x128xf32>
    %2 = tpu.matmul %0, %1, %cst {dimension_numbers = #tpu.dot_dimension_numbers<[1], [0], [0], [1], [0, 0, 1, 1], [], []>} : vector<128x128xbf16>, vector<128x128xbf16>, vector<128x128xf32> -> vector<128x128xf32>
    %3 = arith.truncf %2 : vector<128x128xf32> to vector<128x128xbf16>
    %c0_3 = arith.constant 0 : index
    %c0_4 = arith.constant 0 : index
    %4 = vector.load %arg3[%c0_3, %c0_4] : memref<128x128xbf16, #tpu.memory_space<vmem>>, vector<128x128xbf16>
    tpu.vector_store %arg3[%c0_3, %c0_4], %3 {strides = array<i32>} : memref<128x128xbf16, #tpu.memory_space<vmem>>, vector<128x128xbf16>,
    return
  }
  func.func @transform_0(%arg0: i32) -> (i32, i32) {
    %c0_i32 = arith.constant 0 : i32
    %c0_i32_0 = arith.constant 0 : i32
    return %arg0, %c0_i32 : i32, i32
  }
  func.func @transform_1(%arg0: i32) -> (i32, i32) {
    %c0_i32 = arith.constant 0 : i32
    %c0_i32_0 = arith.constant 0 : i32
    %c0_i32_1 = arith.constant 0 : i32
    return %c0_i32, %c0_i32_0 : i32, i32
  }
  func.func @transform_2(%arg0: i32) -> (i32, i32) {
    %c0_i32 = arith.constant 0 : i32
    %c0_i32_0 = arith.constant 0 : i32
    return %arg0, %c0_i32 : i32, i32
  }
}

</mosaic_0001>

<bundles_post_ra>
// kernel: tpu_custom_call.1
= control target key start
LH: loop header
LB: loop body
LE: loop exit
PB: predicated region body
PF: predicated region fallthrough
CT: control target
= control target key end

     0   :  { %7 = vsyncpa [#allocation3], 0  ;;  %s681_s0 = inlined_call_operand.hbm [shape: bf16[128,128], index: 0, kind: input, shape index: {}]   ;;  %s682_s1 = inlined_call_operand.hbm [shape: bf16[128,128], index: 1, kind: input, shape index: {}]   ;;  %s683_s2 = inlined_call_operand.hbm [shape: bf16[128,128], index: 2, kind: output, shape index: {}]  }
   0x1   :  { %8 = vsyncpa [#allocation6], 0 }
   0x2   :  { %9 = vsyncpa [#allocation4], 0  ;;  %s616_s9 = smov [#allocation2]   ;;  %s544_s13 = scalar_lea.hbm %s681_s0, 1024 }
   0x3   :  { %s15_s10 = sshll.u32 %s616_s9, 4  ;;  %p545_p0 = scmp.ne.s32.totalorder %s681_s0, %s544_s13  ;;  %s16_s10 = int_to_ptr.vmem [resolvable:$true] %s15_s10 }
   0x4   :  { %p548_p1 = scmp.lt.u32.totalorder %s544_s13, %s681_s0 }
   0x6   :  { %p550_p2 = pnand %p548_p1, %p545_p0 }
   0x8   :  { %553 = shalt.err (!%p550_p2)
}
   0x9   :  { %s554_s18 = scalar_lea.vmem %s16_s10, 1024  ;;  %p559_p4 = scmp.lt.s32.totalorder %s16_s10, %s16_s10 }
   0xa   :  { %p555_p3 = scmp.ne.s32.totalorder %s16_s10, %s554_s18  ;;  %p560_p5 = scmp.lt.s32.totalorder %s554_s18, %s554_s18 }
   0xc   :  { %p561_p6 = por %p560_p5, %p559_p4 }
   0xe   :  { %p562_p7 = pnand %p561_p6, %p555_p3 }
  0x10   :  { %565 = shalt.err (!%p562_p7)
}
  0x11   :  { %s617_s19 = smov 64   ;;  %s618_s20 = smov 4  }
  0x12   :  { %21 = dma.hbm_to_vmem [thread:$0]  %s681_s0, 1024, %s16_s10, [#allocation3], %s617_s19, %s617_s19, %s618_s20  }
  0x13   :  { %s619_s23 = smov [#allocation5]   ;;  %s566_s27 = scalar_lea.hbm %s682_s1, 1024 }
  0x14   :  { %s27_s24 = sshll.u32 %s619_s23, 4  ;;  %p567_p8 = scmp.ne.s32.totalorder %s682_s1, %s566_s27  ;;  %s28_s24 = int_to_ptr.vmem [resolvable:$true] %s27_s24 }
  0x15   :  { %p570_p9 = scmp.lt.u32.totalorder %s566_s27, %s682_s1 }
  0x17   :  { %p572_p10 = pnand %p570_p9, %p567_p8 }
  0x19   :  { %575 = shalt.err (!%p572_p10)
}
  0x1a   :  { %s576_s4 = scalar_lea.vmem %s28_s24, 1024  ;;  %p581_p12 = scmp.lt.s32.totalorder %s28_s24, %s28_s24 }
  0x1b   :  { %p577_p11 = scmp.ne.s32.totalorder %s28_s24, %s576_s4  ;;  %p582_p13 = scmp.lt.s32.totalorder %s576_s4, %s576_s4 }
  0x1d   :  { %p583_p0 = por %p582_p13, %p581_p12 }
  0x1f   :  { %p584_p1 = pnand %p583_p0, %p577_p11 }
  0x21   :  { %587 = shalt.err (!%p584_p1)
}
  0x22   :  { %33 = dma.hbm_to_vmem [thread:$0]  %s682_s1, 1024, %s28_s24, [#allocation6], %s617_s19, %s617_s19, %s618_s20  }
  0x23   :  { %610 = dma.done.wait [#allocation3], 1024  }
  0x24   :  { %611 = vsyncadd [#allocation3], 4294966272 }
  0x25   :  { %612 = dma.done.wait [#allocation6], 1024  }
  0x26   :  { %613 = vsyncadd [#allocation6], 4294966272  ;;  %v528_v0 = vld [vmem:[#allocation5] sm:$0xff]   ;;  %v529_v1 = vld [vmem:[#allocation5 + $0x8] sm:$0xff]   ;;  %s620_s1 = smov [#allocation7]  }
  0x27   :  { %475 = vmatprep.subr.bf16.mxu0 %v528_v0  ;;  %507 = vmatprep.subr.bf16.mxu1 %v528_v0  ;;  %v530_v2 = vld [vmem:[#allocation5 + $0x10] sm:$0xff]   ;;  %v531_v3 = vld [vmem:[#allocation5 + $0x18] sm:$0xff]   ;;  %v536_v4 = vld [vmem:[#allocation2] sm:$0xff]   ;;  %s351_s6 = sshll.u32 %s620_s1, 4  ;;  %s352_s6 = int_to_ptr.vmem [resolvable:$true] %s351_s6 }
  0x28   :  { %476 = vmatpush3.bf16.msra.mxu0 %v528_v0  ;;  %515 = vmatpush3.bf16.msra.mxu1 %v528_v0  ;;  %v537_v5 = vld [vmem:[#allocation2 + $0x20] sm:$0xff]   ;;  %v533_v7 = vld [vmem:[#allocation5 + $0x28] sm:$0xff]   ;;  %v534_v8 = vld [vmem:[#allocation5 + $0x30] sm:$0xff]   ;;  %s588_s7 = scalar_lea.vmem %s352_s6, 1024  ;;  %p593_p3 = scmp.lt.s32.totalorder %s352_s6, %s352_s6 }
  0x29   :  { %477 = vmatprep.subr.bf16.mxu0 %v529_v1  ;;  %508 = vmatprep.subr.bf16.mxu1 %v529_v1  ;;  %v532_v6 = vld [vmem:[#allocation5 + $0x20] sm:$0xff]   ;;  %v535_v9 = vld [vmem:[#allocation5 + $0x38] sm:$0xff]   ;;  %v538_v10 = vld [vmem:[#allocation2 + $0x8] sm:$0xff]   ;;  %p589_p2 = scmp.ne.s32.totalorder %s352_s6, %s588_s7  ;;  %p594_p4 = scmp.lt.s32.totalorder %s588_s7, %s588_s7 }
  0x2a   :  { %491 = vmatprep.mubr.bf16.mxu0 %v536_v4  ;;  %499 = vmatprep.mubr.bf16.mxu1 %v537_v5  ;;  %v539_v11 = vld [vmem:[#allocation2 + $0x28] sm:$0xff]   ;;  %v540_v12 = vld [vmem:[#allocation2 + $0x10] sm:$0xff]   ;;  %v542_v14 = vld [vmem:[#allocation2 + $0x18] sm:$0xff]  }
  0x2b   :  { %v541_v13 = vld [vmem:[#allocation2 + $0x30] sm:$0xff]   ;;  %v543_v15 = vld [vmem:[#allocation2 + $0x38] sm:$0xff]   ;;  %p595_p5 = por %p594_p4, %p593_p3 }
  0x2c   :  { %478 = vmatpush3.bf16.msra.mxu0 %v529_v1  ;;  %516 = vmatpush3.bf16.msra.mxu1 %v529_v1 }
  0x2d   :  { %479 = vmatprep.subr.bf16.mxu0 %v530_v2  ;;  %509 = vmatprep.subr.bf16.mxu1 %v530_v2  ;;  %p596_p6 = pnand %p595_p5, %p589_p2 }
  0x30   :  { %480 = vmatpush3.bf16.msra.mxu0 %v530_v2  ;;  %517 = vmatpush3.bf16.msra.mxu1 %v530_v2 }
  0x31   :  { %481 = vmatprep.subr.bf16.mxu0 %v531_v3  ;;  %510 = vmatprep.subr.bf16.mxu1 %v531_v3 }
  0x34   :  { %482 = vmatpush3.bf16.msra.mxu0 %v531_v3  ;;  %518 = vmatpush3.bf16.msra.mxu1 %v531_v3 }
  0x35   :  { %483 = vmatprep.subr.bf16.mxu0 %v532_v6  ;;  %511 = vmatprep.subr.bf16.mxu1 %v532_v6 }
  0x38   :  { %484 = vmatpush3.bf16.msra.mxu0 %v532_v6  ;;  %519 = vmatpush3.bf16.msra.mxu1 %v532_v6 }
  0x39   :  { %485 = vmatprep.subr.bf16.mxu0 %v533_v7  ;;  %512 = vmatprep.subr.bf16.mxu1 %v533_v7 }
  0x3c   :  { %486 = vmatpush3.bf16.msra.mxu0 %v533_v7  ;;  %520 = vmatpush3.bf16.msra.mxu1 %v533_v7 }
  0x3d   :  { %487 = vmatprep.subr.bf16.mxu0 %v534_v8  ;;  %513 = vmatprep.subr.bf16.mxu1 %v534_v8 }
  0x40   :  { %488 = vmatpush3.bf16.msra.mxu0 %v534_v8  ;;  %521 = vmatpush3.bf16.msra.mxu1 %v534_v8 }
  0x41   :  { %489 = vmatprep.subr.bf16.mxu0 %v535_v9  ;;  %514 = vmatprep.subr.bf16.mxu1 %v535_v9 }
  0x44   :  { %490 = vmatpush3.bf16.msra.mxu0 %v535_v9  ;;  %522 = vmatpush3.bf16.msra.mxu1 %v535_v9 }
  0x47   :  { %492 = vmatmul.mubr.bf16.vlgmr.msra.gmra.mrb[0].mxu0 %v538_v10  ;;  %500 = vmatmul.mubr.bf16.vlgmr.msra.gmra.mrb[0].mxu1 %v539_v11 }
  0x48   :  { %495 = vmatprep.mubr.bf16.mxu0 %v540_v12  ;;  %503 = vmatprep.mubr.bf16.mxu1 %v541_v13 }
  0x4f   :  { %496 = vmatmul.mubr.bf16.gmra.mrb[4].mxu0 %v542_v14  ;;  %504 = vmatmul.mubr.bf16.gmra.mrb[4].mxu1 %v543_v15 }
 0x11a   :  { %v493_v16 = vpop.f32.mrb[0].mxu0  ;;  %v501_v17 = vpop.f32.mrb[0].mxu1 }
 0x11b   :  { %v203_v18 = vpop.f32.mrb[1].mxu0  ;;  %v235_v19 = vpop.f32.mrb[1].mxu1 }
 0x11c   :  { %v494_v20 = vpop.f32.mrb[2].mxu0  ;;  %v502_v21 = vpop.f32.mrb[2].mxu1 }
 0x11d   :  { %v420_v22 = vpack.c.bf16 %v494_v20, %v493_v16  ;;  %v440_v23 = vpack.c.bf16 %v502_v21, %v501_v17  ;;  %v206_v24 = vpop.f32.mrb[3].mxu0  ;;  %v238_v25 = vpop.f32.mrb[3].mxu1 }
 0x11e   :  { %v415_v26 = vpack.c.bf16 %v206_v24, %v203_v18  ;;  %v435_v27 = vpack.c.bf16 %v238_v25, %v235_v19 }
 0x11f   :  { %452 = vst [vmem:[#allocation7 + $0x8] sm:$0xff] %v420_v22   ;;  %456 = vst [vmem:[#allocation7 + $0x28] sm:$0xff] %v440_v23  }
 0x120   :  { %416 = vst [vmem:[#allocation7] sm:$0xff] %v415_v26   ;;  %455 = vst [vmem:[#allocation7 + $0x20] sm:$0xff] %v435_v27  }
 0x122   :  { %v497_v28 = vpop.f32.mrb[4].mxu0  ;;  %v505_v29 = vpop.f32.mrb[4].mxu1 }
 0x123   :  { %v219_v30 = vpop.f32.mrb[5].mxu0  ;;  %v251_v31 = vpop.f32.mrb[5].mxu1 }
 0x124   :  { %v498_v32 = vpop.f32.mrb[6].mxu0  ;;  %v506_v33 = vpop.f32.mrb[6].mxu1 }
 0x125   :  { %v430_v34 = vpack.c.bf16 %v498_v32, %v497_v28  ;;  %v450_v35 = vpack.c.bf16 %v506_v33, %v505_v29  ;;  %v222_v36 = vpop.f32.mrb[7].mxu0  ;;  %v254_v37 = vpop.f32.mrb[7].mxu1 }
 0x126   :  { %v425_v38 = vpack.c.bf16 %v222_v36, %v219_v30  ;;  %v445_v39 = vpack.c.bf16 %v254_v37, %v251_v31 }
 0x127   :  { %454 = vst [vmem:[#allocation7 + $0x18] sm:$0xff] %v430_v34   ;;  %458 = vst [vmem:[#allocation7 + $0x38] sm:$0xff] %v450_v35  }
 0x128   :  { %453 = vst [vmem:[#allocation7 + $0x10] sm:$0xff] %v425_v38   ;;  %457 = vst [vmem:[#allocation7 + $0x30] sm:$0xff] %v445_v39  }
 0x129   :  { %599 = shalt.err (!%p596_p6)
}
 0x12a   :  { %s600_s10 = scalar_lea.hbm %s683_s2, 1024 }
 0x12b   :  { %p601_p7 = scmp.ne.s32.totalorder %s683_s2, %s600_s10  ;;  %p604_p8 = scmp.lt.u32.totalorder %s600_s10, %s683_s2 }
 0x12d   :  { %p606_p9 = pnand %p604_p8, %p601_p7 }
 0x12f   :  { %609 = shalt.err (!%p606_p9)
}
 0x130   :  { %357 = dma.vmem_to_hbm [thread:$0]  %s352_s6, 1024, %s683_s2, [#allocation4], %s617_s19, %s617_s19, %s618_s20  }
 0x131   :  { %614 = dma.done.wait [#allocation4], 1024  }
 0x132   :  { %615 = vsyncadd [#allocation4], 4294966272 }
 0x133   :  { %361 = vsyncpa [#allocation3], 1 }
 0x134   :  { %362 = vsyncpa [#allocation6], 1 }
 0x135   :  { %363 = vsyncpa [#allocation4], 1 }

</bundles_post_ra>
